<compile_context>
chip_gen: v7x
topology: tpu7x:2x2x1
jax: 0.10.0
libtpu: 0.0.40
codegen_flags: <defaults>
</compile_context>

<pallas_src>
import jax
import jax.numpy as jnp
from jax import lax
from jax.experimental import pallas as pl
from jax.experimental.pallas import tpu as pltpu

EPS = 1e-5
NEG_SLOPE = 0.2
LANE = 128
VMEM_LIMIT = 48 * 1024 * 1024   # fits v7x's 64 MiB physical VMEM; fine on v5e/v6e


def _round_up(x, m):
    return (x + m - 1) // m * m


def _largest_divisor_leq(n, cap, align=1):
    cap = max(1, min(n, cap))
    for d in range(cap, 0, -1):
        if n % d == 0 and (d % align == 0 or d == n):
            return d
    return n


# --------------- pass 1: conv (4 shifted matmuls) + BatchNorm statistics ---------------

def _conv_stats_kernel(s_ref, w_ref, y_ref, stat_ref):
    """Grid = (batch, row-block).

    s_ref   : (1, Hs, Ws, Kc)  bf16  space-to-depth input (resident per batch elem)
    w_ref   : (4, Kc, Cp)      bf16  weight taps, tap index = di*2 + dj
    y_ref   : (1, TH, Wo, Cp)  f32   pre-BN conv output block
    stat_ref: (1, 2, Cp)       f32   per-batch [sum, sum_of_squares] accumulator
    """
    rb = pl.program_id(1)
    _, th, wo, cp = y_ref.shape
    r0 = pl.multiple_of(rb * th, th)

    acc = jnp.zeros((th * wo, cp), jnp.float32)
    for di in range(2):
        rows = s_ref[0, pl.ds(r0 + di, th), :, :]                 # (TH, Ws, Kc)
        for dj in range(2):
            lhs = rows[:, dj:dj + wo, :].reshape(th * wo, -1)     # (TH*Wo, Kc)
            acc = acc + jnp.dot(lhs, w_ref[2 * di + dj],
                                preferred_element_type=jnp.float32)

    y_ref[0] = acc.reshape(th, wo, cp)

    blk = jnp.concatenate(
        [jnp.sum(acc, axis=0, keepdims=True),
         jnp.sum(acc * acc, axis=0, keepdims=True)], axis=0)      # (2, Cp)

    @pl.when(rb == 0)
    def _():
        stat_ref[0] = blk

    @pl.when(rb != 0)
    def _():
        stat_ref[0] = stat_ref[0] + blk


# --------------- pass 2: BN normalize + LeakyReLU (lane-dense elementwise) -------------

def _bn_lrelu_kernel(y_ref, scale_ref, shift_ref, o_ref):
    z = y_ref[...] * scale_ref[...] + shift_ref[...]
    o_ref[...] = jnp.where(z >= 0, z, NEG_SLOPE * z)


def encoder_layer(x, w, b, gamma, beta):
    """EncoderLayer forward.  x: (N, Cin, H, W) f32, w: (Cout, Cin, 4, 4)."""
    del b  # cancelled exactly by training-mode BatchNorm (per-channel mean subtraction)

    n, cin, h, wdt = x.shape
    cout = w.shape[0]
    assert h % 2 == 0 and wdt % 2 == 0, "EncoderLayer assumes even H and W"
    ho, wo = h // 2, wdt // 2
    hs, ws = ho + 1, wo + 1
    kc = 4 * cin
    cp = _round_up(cout, LANE)           # lane-dense padded channel count

    # NCHW -> NHWC, spatial pad=1, space-to-depth by 2 (channel order (dh, dw, c)):
    # s2d[n, i, j, (dh*2+dw)*cin + c] = xpad[n, 2i+dh, 2j+dw, c].
    x_nhwc = jnp.transpose(x, (0, 2, 3, 1))
    xp = jnp.pad(x_nhwc, ((0, 0), (1, 1), (1, 1), (0, 0)))
    s2d = (xp.reshape(n, hs, 2, ws, 2, cin)
             .transpose(0, 1, 3, 2, 4, 5)
             .reshape(n, hs, ws, kc)
             .astype(jnp.bfloat16))

    # Weight taps: wr[di*2+dj, (dh*2+dw)*cin + c, o] = w[o, c, 2*di+dh, 2*dj+dw].
    wr = (w.reshape(cout, cin, 2, 2, 2, 2)    # (o, c, di, dh, dj, dw)
            .transpose(2, 4, 3, 5, 1, 0)      # (di, dj, dh, dw, c, o)
            .reshape(4, kc, cout))
    wr = jnp.pad(wr, ((0, 0), (0, 0), (0, cp - cout))).astype(jnp.bfloat16)

    # Row-block size: largest divisor of Ho giving ~512 output pixels per matmul.
    th = _largest_divisor_leq(ho, max(1, 512 // wo))

    y_pad, stats = pl.pallas_call(
        _conv_stats_kernel,
        out_shape=(
            jax.ShapeDtypeStruct((n, ho, wo, cp), jnp.float32),
            jax.ShapeDtypeStruct((n, 2, cp), jnp.float32),
        ),
        grid_spec=pltpu.PrefetchScalarGridSpec(
            num_scalar_prefetch=0,
            grid=(n, ho // th),
            in_specs=[
                # full s2d image per batch elem, resident across the row-block axis
                pl.BlockSpec((1, hs, ws, kc), lambda bi, ri: (bi, 0, 0, 0)),
                pl.BlockSpec((4, kc, cp), lambda bi, ri: (0, 0, 0)),
            ],
            out_specs=(
                pl.BlockSpec((1, th, wo, cp), lambda bi, ri: (bi, ri, 0, 0)),
                pl.BlockSpec((1, 2, cp), lambda bi, ri: (bi, 0, 0)),
            ),
        ),
        compiler_params=pltpu.CompilerParams(
            dimension_semantics=("parallel", "arbitrary"),
            vmem_limit_bytes=VMEM_LIMIT,
        ),
    )(s2d, wr)
    # TODO(synk): for very large images, tile the row axis of s2d with a manual
    # halo DMA (pl.ANY + make_async_copy) instead of keeping the image resident.

    # Fold BN (training batch stats, biased var) into per-channel scale/shift.
    m = n * ho * wo
    tot = jnp.sum(stats, axis=0)                       # (2, Cp)
    mean = tot[0] / m
    var = jnp.maximum(tot[1] / m - mean * mean, 0.0)   # single-pass var, f32
    gamma_p = jnp.pad(gamma.astype(jnp.float32), (0, cp - cout))
    beta_p = jnp.pad(beta.astype(jnp.float32), (0, cp - cout))
    scale = gamma_p * lax.rsqrt(var + EPS)
    shift = beta_p - mean * scale

    y_flat = y_pad.reshape(m, cp)                      # free row-major reshape
    tm = _largest_divisor_leq(m, 1024, align=8)

    out_pad = pl.pallas_call(
        _bn_lrelu_kernel,
        out_shape=jax.ShapeDtypeStruct((m, cp), jnp.float32),
        grid_spec=pltpu.PrefetchScalarGridSpec(
            num_scalar_prefetch=0,
            grid=(m // tm,),
            in_specs=[
                pl.BlockSpec((tm, cp), lambda i: (i, 0)),
                pl.BlockSpec((1, cp), lambda i: (0, 0)),
                pl.BlockSpec((1, cp), lambda i: (0, 0)),
            ],
            out_specs=pl.BlockSpec((tm, cp), lambda i: (i, 0)),
        ),
        compiler_params=pltpu.CompilerParams(
            dimension_semantics=("parallel",),
            vmem_limit_bytes=VMEM_LIMIT,
        ),
    )(y_flat, scale.reshape(1, cp), shift.reshape(1, cp))

    out = out_pad[:, :cout].reshape(n, ho, wo, cout)
    # TODO(synk): a real multi-layer pipeline should stay NHWC end-to-end; NCHW is
    # only returned here to match the PyTorch module's interface.
    return jnp.transpose(out, (0, 3, 1, 2))


def _reference(x, w, b, gamma, beta, conv_dtype=jnp.float32):
    y = lax.conv_general_dilated(
        x.astype(conv_dtype), w.astype(conv_dtype),
        window_strides=(2, 2), padding=((1, 1), (1, 1)),
        dimension_numbers=('NCHW', 'OIHW', 'NCHW'),
        preferred_element_type=jnp.float32)
    y = y + b.reshape(1, -1, 1, 1)
    mean = jnp.mean(y, axis=(0, 2, 3), keepdims=True)
    var = jnp.mean((y - mean) ** 2, axis=(0, 2, 3), keepdims=True)
    z = (gamma.reshape(1, -1, 1, 1) * (y - mean) * lax.rsqrt(var + EPS)
         + beta.reshape(1, -1, 1, 1))
    return jnp.where(z >= 0, z, NEG_SLOPE * z)


if __name__ == "__main__":
    key = jax.random.PRNGKey(0)
    kx, kw, kb = jax.random.split(key, 3)

    N, Cin, H, W = 2, 4, 16, 16
    Cout = 8

    x = jax.random.normal(kx, (N, Cin, H, W), dtype=jnp.float32)

    # Deterministic parameter init (shapes per nn.Conv2d(Cin, Cout, 4, 2, 1)).
    fan_in = Cin * 4 * 4
    bound = 1.0 / (fan_in ** 0.5)
    w = jax.random.uniform(kw, (Cout, Cin, 4, 4), jnp.float32, -bound, bound)
    b = jax.random.uniform(kb, (Cout,), jnp.float32, -bound, bound)
    gamma = jnp.ones((Cout,), jnp.float32)    # BatchNorm2d default weight
    beta = jnp.zeros((Cout,), jnp.float32)    # BatchNorm2d default bias

    out = jax.jit(encoder_layer)(x, w, b, gamma, beta)
    out = jax.block_until_ready(out)

    assert out.shape == (N, Cout, H // 2, W // 2), out.shape
    # Tight check vs a reference whose conv is also fed bf16 (f32 accumulation).
    ref_bf16 = _reference(x, w, b, gamma, beta, conv_dtype=jnp.bfloat16)
    assert jnp.allclose(out, ref_bf16, atol=2e-3, rtol=2e-3), \
        float(jnp.max(jnp.abs(out - ref_bf16)))
    # Loose sanity check vs the pure-f32 reference (only bf16 MXU rounding differs).
    ref_f32 = _reference(x, w, b, gamma, beta, conv_dtype=jnp.float32)
    assert jnp.allclose(out, ref_f32, atol=5e-2, rtol=5e-2), \
        float(jnp.max(jnp.abs(out - ref_f32)))
    print("KERNEL_OK")
</pallas_src>

<mosaic_0001>
module attributes {stable_mosaic.version = 11 : i64} {
  func.func @_conv_stats_kernel(%arg0: i32, %arg1: i32, %arg2: memref<1x9x9x16xbf16, #tpu.memory_space<vmem>>, %arg3: memref<4x16x128xbf16, #tpu.memory_space<vmem>>, %arg4: memref<1x8x8x128xf32, #tpu.memory_space<vmem>>, %arg5: memref<1x2x128xf32, #tpu.memory_space<vmem>>) attributes {dimension_semantics = [#tpu.dimension_semantics<parallel>, #tpu.dimension_semantics<arbitrary>], iteration_bounds = array<i64: 2, 1>, scalar_prefetch = 0 : i64, scratch_operands = 0 : i64, tpu.core_type = #tpu.core_type<tc>, window_params = [{transform_indices = @transform_0, window_bounds = array<i64: 1, 9, 9, 16>}, {pipeline_mode = #tpu.pipeline_mode<synchronous>, transform_indices = @transform_1, window_bounds = array<i64: 4, 16, 128>}, {transform_indices = @transform_2, window_bounds = array<i64: 1, 8, 8, 128>}, {transform_indices = @transform_3, window_bounds = array<i64: 1, 2, 128>}]} {
    %c8_i32 = arith.constant 8 : i32
    %0 = arith.muli %arg1, %c8_i32 : i32
    %1 = tpu.assume_multiple %0, 8 : i32
    %cst = arith.constant 0.000000e+00 : f32
    %2 = vector.broadcast %cst : f32 to vector<64x128xf32>
    %c0_i32 = arith.constant 0 : i32
    %3 = arith.addi %1, %c0_i32 : i32
    %c0 = arith.constant 0 : index
    %4 = arith.index_cast %3 : i32 to index
    %c0_0 = arith.constant 0 : index
    %c0_1 = arith.constant 0 : index
    %5 = vector.load %arg2[%c0, %4, %c0_0, %c0_1] : memref<1x9x9x16xbf16, #tpu.memory_space<vmem>>, vector<1x8x9x16xbf16>
    %6 = vector.shape_cast %5 : vector<1x8x9x16xbf16> to vector<8x9x16xbf16>
    %7 = vector.extract_strided_slice %6 {offsets = [0, 0, 0], sizes = [8, 8, 16], strides = [1, 1, 1]} : vector<8x9x16xbf16> to vector<8x8x16xbf16>
    %8 = vector.shape_cast %7 : vector<8x8x16xbf16> to vector<64x16xbf16>
    %c0_2 = arith.constant 0 : index
    %c0_3 = arith.constant 0 : index
    %c0_4 = arith.constant 0 : index
    %9 = vector.load %arg3[%c0_2, %c0_3, %c0_4] : memref<4x16x128xbf16, #tpu.memory_space<vmem>>, vector<1x16x128xbf16>
    %10 = vector.shape_cast %9 : vector<1x16x128xbf16> to vector<16x128xbf16>
    %cst_5 = arith.constant dense<0.000000e+00> : vector<64x128xf32>
    %11 = tpu.matmul %8, %10, %cst_5 {dimension_numbers = #tpu.dot_dimension_numbers<[1], [0], [0], [1], [0, 0, 1, 1], [], []>} : vector<64x16xbf16>, vector<16x128xbf16>, vector<64x128xf32> -> vector<64x128xf32>
    %12 = arith.addf %2, %11 : vector<64x128xf32>
    %13 = vector.extract_strided_slice %6 {offsets = [0, 1, 0], sizes = [8, 8, 16], strides = [1, 1, 1]} : vector<8x9x16xbf16> to vector<8x8x16xbf16>
    %14 = vector.shape_cast %13 : vector<8x8x16xbf16> to vector<64x16xbf16>
    %c1 = arith.constant 1 : index
    %c0_6 = arith.constant 0 : index
    %c0_7 = arith.constant 0 : index
    %15 = vector.load %arg3[%c1, %c0_6, %c0_7] : memref<4x16x128xbf16, #tpu.memory_space<vmem>>, vector<1x16x128xbf16>
    %16 = vector.shape_cast %15 : vector<1x16x128xbf16> to vector<16x128xbf16>
    %cst_8 = arith.constant dense<0.000000e+00> : vector<64x128xf32>
    %17 = tpu.matmul %14, %16, %cst_8 {dimension_numbers = #tpu.dot_dimension_numbers<[1], [0], [0], [1], [0, 0, 1, 1], [], []>} : vector<64x16xbf16>, vector<16x128xbf16>, vector<64x128xf32> -> vector<64x128xf32>
    %18 = arith.addf %12, %17 : vector<64x128xf32>
    %c1_i32 = arith.constant 1 : i32
    %19 = arith.addi %1, %c1_i32 : i32
    %c0_9 = arith.constant 0 : index
    %20 = arith.index_cast %19 : i32 to index
    %c0_10 = arith.constant 0 : index
    %c0_11 = arith.constant 0 : index
    %21 = vector.load %arg2[%c0_9, %20, %c0_10, %c0_11] : memref<1x9x9x16xbf16, #tpu.memory_space<vmem>>, vector<1x8x9x16xbf16>
    %22 = vector.shape_cast %21 : vector<1x8x9x16xbf16> to vector<8x9x16xbf16>
    %23 = vector.extract_strided_slice %22 {offsets = [0, 0, 0], sizes = [8, 8, 16], strides = [1, 1, 1]} : vector<8x9x16xbf16> to vector<8x8x16xbf16>
    %24 = vector.shape_cast %23 : vector<8x8x16xbf16> to vector<64x16xbf16>
    %c2 = arith.constant 2 : index
    %c0_12 = arith.constant 0 : index
    %c0_13 = arith.constant 0 : index
    %25 = vector.load %arg3[%c2, %c0_12, %c0_13] : memref<4x16x128xbf16, #tpu.memory_space<vmem>>, vector<1x16x128xbf16>
    %26 = vector.shape_cast %25 : vector<1x16x128xbf16> to vector<16x128xbf16>
    %cst_14 = arith.constant dense<0.000000e+00> : vector<64x128xf32>
    %27 = tpu.matmul %24, %26, %cst_14 {dimension_numbers = #tpu.dot_dimension_numbers<[1], [0], [0], [1], [0, 0, 1, 1], [], []>} : vector<64x16xbf16>, vector<16x128xbf16>, vector<64x128xf32> -> vector<64x128xf32>
    %28 = arith.addf %18, %27 : vector<64x128xf32>
    %29 = vector.extract_strided_slice %22 {offsets = [0, 1, 0], sizes = [8, 8, 16], strides = [1, 1, 1]} : vector<8x9x16xbf16> to vector<8x8x16xbf16>
    %30 = vector.shape_cast %29 : vector<8x8x16xbf16> to vector<64x16xbf16>
    %c3 = arith.constant 3 : index
    %c0_15 = arith.constant 0 : index
    %c0_16 = arith.constant 0 : index
    %31 = vector.load %arg3[%c3, %c0_15, %c0_16] : memref<4x16x128xbf16, #tpu.memory_space<vmem>>, vector<1x16x128xbf16>
    %32 = vector.shape_cast %31 : vector<1x16x128xbf16> to vector<16x128xbf16>
    %cst_17 = arith.constant dense<0.000000e+00> : vector<64x128xf32>
    %33 = tpu.matmul %30, %32, %cst_17 {dimension_numbers = #tpu.dot_dimension_numbers<[1], [0], [0], [1], [0, 0, 1, 1], [], []>} : vector<64x16xbf16>, vector<16x128xbf16>, vector<64x128xf32> -> vector<64x128xf32>
    %34 = arith.addf %28, %33 : vector<64x128xf32>
    %35 = vector.shape_cast %34 : vector<64x128xf32> to vector<8x8x128xf32>
    %c0_18 = arith.constant 0 : index
    %c0_19 = arith.constant 0 : index
    %c0_20 = arith.constant 0 : index
    %c0_21 = arith.constant 0 : index
    %36 = vector.load %arg4[%c0_18, %c0_19, %c0_20, %c0_21] : memref<1x8x8x128xf32, #tpu.memory_space<vmem>>, vector<1x8x8x128xf32>
    %37 = vector.shape_cast %36 : vector<1x8x8x128xf32> to vector<8x8x128xf32>
    %38 = vector.shape_cast %35 : vector<8x8x128xf32> to vector<1x8x8x128xf32>
    tpu.vector_store %arg4[%c0_18, %c0_19, %c0_20, %c0_21], %38 {strides = array<i32>} : memref<1x8x8x128xf32, #tpu.memory_space<vmem>>, vector<1x8x8x128xf32>,
    %cst_22 = arith.constant dense<0.000000e+00> : vector<128xf32>
    %39 = vector.multi_reduction <add>, %34, %cst_22 [0] : vector<64x128xf32> to vector<128xf32>
    %40 = vector.shape_cast %39 : vector<128xf32> to vector<1x128xf32>
    %41 = arith.mulf %34, %34 : vector<64x128xf32>
    %cst_23 = arith.constant dense<0.000000e+00> : vector<128xf32>
    %42 = vector.multi_reduction <add>, %41, %cst_23 [0] : vector<64x128xf32> to vector<128xf32>
    %43 = vector.shape_cast %42 : vector<128xf32> to vector<1x128xf32>
    %44 = tpu.concatenate %40, %43 in 0 : vector<1x128xf32>, vector<1x128xf32> -> vector<2x128xf32>
    %c0_i32_24 = arith.constant 0 : i32
    %45 = arith.cmpi eq, %arg1, %c0_i32_24 : i32
    %46 = arith.extui %45 : i1 to i32
    %c0_i32_25 = arith.constant 0 : i32
    %47 = arith.cmpi ne, %46, %c0_i32_25 : i32
    scf.if %47 {
      %c0_28 = arith.constant 0 : index
      %c0_29 = arith.constant 0 : index
      %c0_30 = arith.constant 0 : index
      %51 = vector.load %arg5[%c0_28, %c0_29, %c0_30] : memref<1x2x128xf32, #tpu.memory_space<vmem>>, vector<1x2x128xf32>
      %52 = vector.shape_cast %51 : vector<1x2x128xf32> to vector<2x128xf32>
      %53 = vector.shape_cast %44 : vector<2x128xf32> to vector<1x2x128xf32>
      tpu.vector_store %arg5[%c0_28, %c0_29, %c0_30], %53 {strides = array<i32>} : memref<1x2x128xf32, #tpu.memory_space<vmem>>, vector<1x2x128xf32>,
    } else {
    }
    %c0_i32_26 = arith.constant 0 : i32
    %48 = arith.cmpi ne, %arg1, %c0_i32_26 : i32
    %49 = arith.extui %48 : i1 to i32
    %c0_i32_27 = arith.constant 0 : i32
    %50 = arith.cmpi ne, %49, %c0_i32_27 : i32
    scf.if %50 {
      %c0_28 = arith.constant 0 : index
      %c0_29 = arith.constant 0 : index
      %c0_30 = arith.constant 0 : index
      %51 = vector.load %arg5[%c0_28, %c0_29, %c0_30] : memref<1x2x128xf32, #tpu.memory_space<vmem>>, vector<1x2x128xf32>
      %52 = vector.shape_cast %51 : vector<1x2x128xf32> to vector<2x128xf32>
      %53 = arith.addf %52, %44 : vector<2x128xf32>
      %c0_31 = arith.constant 0 : index
      %c0_32 = arith.constant 0 : index
      %c0_33 = arith.constant 0 : index
      %54 = vector.load %arg5[%c0_31, %c0_32, %c0_33] : memref<1x2x128xf32, #tpu.memory_space<vmem>>, vector<1x2x128xf32>
      %55 = vector.shape_cast %54 : vector<1x2x128xf32> to vector<2x128xf32>
      %56 = vector.shape_cast %53 : vector<2x128xf32> to vector<1x2x128xf32>
      tpu.vector_store %arg5[%c0_31, %c0_32, %c0_33], %56 {strides = array<i32>} : memref<1x2x128xf32, #tpu.memory_space<vmem>>, vector<1x2x128xf32>,
    } else {
    }
    return
  }
  func.func @transform_0(%arg0: i32, %arg1: i32) -> (i32, i32, i32, i32) {
    %c0_i32 = arith.constant 0 : i32
    %c0_i32_0 = arith.constant 0 : i32
    %c0_i32_1 = arith.constant 0 : i32
    %c0_i32_2 = arith.constant 0 : i32
    return %arg0, %c0_i32, %c0_i32_0, %c0_i32_1 : i32, i32, i32, i32
  }
  func.func @transform_1(%arg0: i32, %arg1: i32) -> (i32, i32, i32) {
    %c0_i32 = arith.constant 0 : i32
    %c0_i32_0 = arith.constant 0 : i32
    %c0_i32_1 = arith.constant 0 : i32
    %c0_i32_2 = arith.constant 0 : i32
    return %c0_i32, %c0_i32_0, %c0_i32_1 : i32, i32, i32
  }
  func.func @transform_2(%arg0: i32, %arg1: i32) -> (i32, i32, i32, i32) {
    %c0_i32 = arith.constant 0 : i32
    %c0_i32_0 = arith.constant 0 : i32
    %c0_i32_1 = arith.constant 0 : i32
    return %arg0, %arg1, %c0_i32, %c0_i32_0 : i32, i32, i32, i32
  }
  func.func @transform_3(%arg0: i32, %arg1: i32) -> (i32, i32, i32) {
    %c0_i32 = arith.constant 0 : i32
    %c0_i32_0 = arith.constant 0 : i32
    %c0_i32_1 = arith.constant 0 : i32
    return %arg0, %c0_i32, %c0_i32_0 : i32, i32, i32
  }
}

module attributes {stable_mosaic.version = 11 : i64} {
  func.func @_bn_lrelu_kernel(%arg0: i32, %arg1: memref<128x128xf32, #tpu.memory_space<vmem>>, %arg2: memref<1x128xf32, #tpu.memory_space<vmem>>, %arg3: memref<1x128xf32, #tpu.memory_space<vmem>>, %arg4: memref<128x128xf32, #tpu.memory_space<vmem>>) attributes {dimension_semantics = [#tpu.dimension_semantics<parallel>], iteration_bounds = array<i64: 1>, scalar_prefetch = 0 : i64, scratch_operands = 0 : i64, tpu.core_type = #tpu.core_type<tc>, window_params = [{transform_indices = @transform_0, window_bounds = array<i64: 128, 128>}, {pipeline_mode = #tpu.pipeline_mode<synchronous>, transform_indices = @transform_1, window_bounds = array<i64: 1, 128>}, {pipeline_mode = #tpu.pipeline_mode<synchronous>, transform_indices = @transform_2, window_bounds = array<i64: 1, 128>}, {transform_indices = @transform_3, window_bounds = array<i64: 128, 128>}]} {
    %c0 = arith.constant 0 : index
    %c0_0 = arith.constant 0 : index
    %0 = vector.load %arg1[%c0, %c0_0] : memref<128x128xf32, #tpu.memory_space<vmem>>, vector<128x128xf32>
    %c0_1 = arith.constant 0 : index
    %c0_2 = arith.constant 0 : index
    %1 = vector.load %arg2[%c0_1, %c0_2] : memref<1x128xf32, #tpu.memory_space<vmem>>, vector<1x128xf32>
    %2 = vector.broadcast %1 : vector<1x128xf32> to vector<128x128xf32>
    %3 = arith.mulf %0, %2 : vector<128x128xf32>
    %c0_3 = arith.constant 0 : index
    %c0_4 = arith.constant 0 : index
    %4 = vector.load %arg3[%c0_3, %c0_4] : memref<1x128xf32, #tpu.memory_space<vmem>>, vector<1x128xf32>
    %5 = vector.broadcast %4 : vector<1x128xf32> to vector<128x128xf32>
    %6 = arith.addf %3, %5 : vector<128x128xf32>
    %cst = arith.constant 0.000000e+00 : f32
    %7 = vector.broadcast %cst : f32 to vector<128x128xf32>
    %8 = arith.cmpf oge, %6, %7 : vector<128x128xf32>
    %cst_5 = arith.constant 2.000000e-01 : f32
    %9 = vector.broadcast %cst_5 : f32 to vector<128x128xf32>
    %10 = arith.mulf %9, %6 : vector<128x128xf32>
    %11 = arith.select %8, %6, %10 : vector<128x128xi1>, vector<128x128xf32>
    %c0_6 = arith.constant 0 : index
    %c0_7 = arith.constant 0 : index
    %12 = vector.load %arg4[%c0_6, %c0_7] : memref<128x128xf32, #tpu.memory_space<vmem>>, vector<128x128xf32>
    tpu.vector_store %arg4[%c0_6, %c0_7], %11 {strides = array<i32>} : memref<128x128xf32, #tpu.memory_space<vmem>>, vector<128x128xf32>,
    return
  }
  func.func @transform_0(%arg0: i32) -> (i32, i32) {
    %c0_i32 = arith.constant 0 : i32
    %c0_i32_0 = arith.constant 0 : i32
    return %arg0, %c0_i32 : i32, i32
  }
  func.func @transform_1(%arg0: i32) -> (i32, i32) {
    %c0_i32 = arith.constant 0 : i32
    %c0_i32_0 = arith.constant 0 : i32
    %c0_i32_1 = arith.constant 0 : i32
    return %c0_i32, %c0_i32_0 : i32, i32
  }
  func.func @transform_2(%arg0: i32) -> (i32, i32) {
    %c0_i32 = arith.constant 0 : i32
    %c0_i32_0 = arith.constant 0 : i32
    %c0_i32_1 = arith.constant 0 : i32
    return %c0_i32, %c0_i32_0 : i32, i32
  }
  func.func @transform_3(%arg0: i32) -> (i32, i32) {
    %c0_i32 = arith.constant 0 : i32
    %c0_i32_0 = arith.constant 0 : i32
    return %arg0, %c0_i32 : i32, i32
  }
}

</mosaic_0001>

<bundles_post_ra>
// kernel: encoder_layer.3
= control target key start
LH: loop header
LB: loop body
LE: loop exit
PB: predicated region body
PF: predicated region fallthrough
CT: control target
= control target key end

     0   :  { %s305_s0 = inlined_call_operand.vmem [shape: f32[128,128], index: 0, kind: input, shape index: {}]   ;;  %s306_s1 = inlined_call_operand.vmem [shape: f32[1,128], index: 1, kind: input, shape index: {}]   ;;  %s307_s2 = inlined_call_operand.vmem [shape: f32[1,128], index: 2, kind: input, shape index: {}]   ;;  %s308_s3 = inlined_call_operand.vmem [shape: f32[128,128], index: 3, kind: output, shape index: {}]  }
   0x1   :  { %v14_v0 = vld [vmem:[%s305_s0] sm:$0xff]  ;;  %v15_v4 = vld [vmem:[%s305_s0 + $0x8] sm:$0xff]  ;;  %v16_v5 = vld [vmem:[%s305_s0 + $0x10] sm:$0xff] }
   0x2   :  { %v172_v1 = vld [vmem:[%s306_s1] ss:$0 sm:$0xff]  ;;  %v17_v6 = vld [vmem:[%s305_s0 + $0x18] sm:$0xff]  ;;  %v19_v11 = vld [vmem:[%s305_s0 + $0x28] sm:$0xff] }
   0x3   :  { %v177_v2 = vld [vmem:[%s307_s2] ss:$0 sm:$0xff]  ;;  %v37_v3 = vmul.f32 %v172_v1, %v14_v0  ;;  %v38_v7 = vmul.f32 %v172_v1, %v15_v4  ;;  %v39_v8 = vmul.f32 %v172_v1, %v16_v5  ;;  %v40_v9 = vmul.f32 %v172_v1, %v17_v6  ;;  %v20_v12 = vld [vmem:[%s305_s0 + $0x30] sm:$0xff]  ;;  %v21_v17 = vld [vmem:[%s305_s0 + $0x38] sm:$0xff] }
   0x4   :  { %v18_v10 = vld [vmem:[%s305_s0 + $0x20] sm:$0xff]  ;;  %v42_v15 = vmul.f32 %v172_v1, %v19_v11  ;;  %v43_v16 = vmul.f32 %v172_v1, %v20_v12  ;;  %v44_v21 = vmul.f32 %v172_v1, %v21_v17  ;;  %v23_v30 = vld [vmem:[%s305_s0 + $0x48] sm:$0xff]  ;;  %v24_v31 = vld [vmem:[%s305_s0 + $0x50] sm:$0xff] }
   0x5   :  { %v60_v13 = vadd.f32 %v177_v2, %v37_v3  ;;  %v41_v14 = vmul.f32 %v172_v1, %v18_v10  ;;  %v61_v18 = vadd.f32 %v177_v2, %v38_v7  ;;  %v62_v19 = vadd.f32 %v177_v2, %v39_v8  ;;  %v22_v25 = vld [vmem:[%s305_s0 + $0x40] sm:$0xff]  ;;  %v25_v43 = vld [vmem:[%s305_s0 + $0x58] sm:$0xff]  ;;  %v27_v45 = vld [vmem:[%s305_s0 + $0x68] sm:$0xff] }
   0x6   :  { %v63_v20 = vadd.f32 %v177_v2, %v40_v9  ;;  %v65_v24 = vadd.f32 %v177_v2, %v42_v15  ;;  %v66_v37 = vadd.f32 %v177_v2, %v43_v16  ;;  %v67_v38 = vadd.f32 %v177_v2, %v44_v21  ;;  %v26_v44 = vld [vmem:[%s305_s0 + $0x60] sm:$0xff]  ;;  %v28_v56 = vld [vmem:[%s305_s0 + $0x70] sm:$0xff]  ;;  %v29_v4 = vld [vmem:[%s305_s0 + $0x78] sm:$0xff] }
   0x7   :  { %vm76_vm0 = vcmp.ge.f32.partialorder %v60_v13, 0.0  ;;  %v92_v22 = vmul.f32 0.2, %v60_v13  ;;  %v64_v23 = vadd.f32 %v177_v2, %v41_v14  ;;  %vm77_vm1 = vcmp.ge.f32.partialorder %v61_v18, 0.0 }
   0x8   :  { %v93_v26 = vmul.f32 0.2, %v61_v18  ;;  %vm78_vm2 = vcmp.ge.f32.partialorder %v62_v19, 0.0  ;;  %v94_v27 = vmul.f32 0.2, %v62_v19  ;;  %vm79_vm3 = vcmp.ge.f32.partialorder %v63_v20, 0.0 }
   0x9   :  { %v108_v28 = vsel %vm76_vm0, %v60_v13, %v92_v22  ;;  %v95_v29 = vmul.f32 0.2, %v63_v20  ;;  %vm80_vm4 = vcmp.ge.f32.partialorder %v64_v23, 0.0  ;;  %v96_v34 = vmul.f32 0.2, %v64_v23 }
   0xa   :  { %124 = vst [vmem:[%s308_s3] sm:$0xff] %v108_v28  ;;  %v109_v32 = vsel %vm77_vm1, %v61_v18, %v93_v26  ;;  %v110_v33 = vsel %vm78_vm2, %v62_v19, %v94_v27  ;;  %vm81_vm5 = vcmp.ge.f32.partialorder %v65_v24, 0.0  ;;  %v97_v36 = vmul.f32 0.2, %v65_v24 }
   0xb   :  { %125 = vst [vmem:[%s308_s3 + $0x8] sm:$0xff] %v109_v32  ;;  %126 = vst [vmem:[%s308_s3 + $0x10] sm:$0xff] %v110_v33  ;;  %v111_v35 = vsel %vm79_vm3, %v63_v20, %v95_v29  ;;  %v112_v39 = vsel %vm80_vm4, %v64_v23, %v96_v34  ;;  %v45_v40 = vmul.f32 %v172_v1, %v22_v25  ;;  %vm82_vm6 = vcmp.ge.f32.partialorder %v66_v37, 0.0 }
   0xc   :  { %127 = vst [vmem:[%s308_s3 + $0x18] sm:$0xff] %v111_v35  ;;  %v46_v41 = vmul.f32 %v172_v1, %v23_v30  ;;  %v47_v42 = vmul.f32 %v172_v1, %v24_v31  ;;  %128 = vst [vmem:[%s308_s3 + $0x20] sm:$0xff] %v112_v39  ;;  %v113_v46 = vsel %vm81_vm5, %v65_v24, %v97_v36  ;;  %v98_v47 = vmul.f32 0.2, %v66_v37 }
   0xd   :  { %vm83_vm7 = vcmp.ge.f32.partialorder %v67_v38, 0.0  ;;  %129 = vst [vmem:[%s308_s3 + $0x28] sm:$0xff] %v113_v46  ;;  %v99_v48 = vmul.f32 0.2, %v67_v38  ;;  %v68_v49 = vadd.f32 %v177_v2, %v45_v40  ;;  %v48_v53 = vmul.f32 %v172_v1, %v25_v43 }
   0xe   :  { %v69_v50 = vadd.f32 %v177_v2, %v46_v41  ;;  %v70_v51 = vadd.f32 %v177_v2, %v47_v42  ;;  %v114_v52 = vsel %vm82_vm6, %v66_v37, %v98_v47  ;;  %v49_v54 = vmul.f32 %v172_v1, %v26_v44 }
   0xf   :  { %v50_v55 = vmul.f32 %v172_v1, %v27_v45  ;;  %130 = vst [vmem:[%s308_s3 + $0x30] sm:$0xff] %v114_v52  ;;  %v115_v57 = vsel %vm83_vm7, %v67_v38, %v99_v48  ;;  %vm84_vm8 = vcmp.ge.f32.partialorder %v68_v49, 0.0  ;;  %v100_v58 = vmul.f32 0.2, %v68_v49 }
  0x10   :  { %vm85_vm9 = vcmp.ge.f32.partialorder %v69_v50, 0.0  ;;  %131 = vst [vmem:[%s308_s3 + $0x38] sm:$0xff] %v115_v57  ;;  %v101_v59 = vmul.f32 0.2, %v69_v50  ;;  %vm86_vm10 = vcmp.ge.f32.partialorder %v70_v51, 0.0  ;;  %v71_v61 = vadd.f32 %v177_v2, %v48_v53 }
  0x11   :  { %v102_v60 = vmul.f32 0.2, %v70_v51  ;;  %v116_v62 = vsel %vm84_vm8, %v68_v49, %v100_v58  ;;  %v72_v63 = vadd.f32 %v177_v2, %v49_v54  ;;  %v73_v0 = vadd.f32 %v177_v2, %v50_v55 }
  0x12   :  { %v51_v3 = vmul.f32 %v172_v1, %v28_v56  ;;  %132 = vst [vmem:[%s308_s3 + $0x40] sm:$0xff] %v116_v62  ;;  %v117_v5 = vsel %vm85_vm9, %v69_v50, %v101_v59  ;;  %vm87_vm11 = vcmp.ge.f32.partialorder %v71_v61, 0.0  ;;  %v103_v7 = vmul.f32 0.2, %v71_v61 }
  0x13   :  { %v118_v6 = vsel %vm86_vm10, %v70_v51, %v102_v60  ;;  %133 = vst [vmem:[%s308_s3 + $0x48] sm:$0xff] %v117_v5  ;;  %vm88_vm12 = vcmp.ge.f32.partialorder %v72_v63, 0.0  ;;  %v104_v8 = vmul.f32 0.2, %v72_v63  ;;  %vm89_vm13 = vcmp.ge.f32.partialorder %v73_v0, 0.0 }
  0x14   :  { %134 = vst [vmem:[%s308_s3 + $0x50] sm:$0xff] %v118_v6  ;;  %v105_v9 = vmul.f32 0.2, %v73_v0  ;;  %v119_v10 = vsel %vm87_vm11, %v71_v61, %v103_v7  ;;  %v74_v11 = vadd.f32 %v177_v2, %v51_v3  ;;  %v52_v12 = vmul.f32 %v172_v1, %v29_v4 }
  0x15   :  { %135 = vst [vmem:[%s308_s3 + $0x58] sm:$0xff] %v119_v10  ;;  %v120_v13 = vsel %vm88_vm12, %v72_v63, %v104_v8 }
  0x16   :  { %v121_v14 = vsel %vm89_vm13, %v73_v0, %v105_v9  ;;  %136 = vst [vmem:[%s308_s3 + $0x60] sm:$0xff] %v120_v13  ;;  %vm90_vm14 = vcmp.ge.f32.partialorder %v74_v11, 0.0  ;;  %v106_v15 = vmul.f32 0.2, %v74_v11  ;;  %v75_v16 = vadd.f32 %v177_v2, %v52_v12 }
  0x17   :  { %137 = vst [vmem:[%s308_s3 + $0x68] sm:$0xff] %v121_v14 }
  0x18   :  { %v122_v17 = vsel %vm90_vm14, %v74_v11, %v106_v15  ;;  %vm91_vm15 = vcmp.ge.f32.partialorder %v75_v16, 0.0  ;;  %v107_v1 = vmul.f32 0.2, %v75_v16 }
  0x19   :  { %138 = vst [vmem:[%s308_s3 + $0x70] sm:$0xff] %v122_v17 }
  0x1a   :  { %v123_v18 = vsel %vm91_vm15, %v75_v16, %v107_v1 }
  0x1b   :  { %139 = vst [vmem:[%s308_s3 + $0x78] sm:$0xff] %v123_v18 }

// kernel: encoder_layer.2
= control target key start
LH: loop header
LB: loop body
LE: loop exit
PB: predicated region body
PF: predicated region fallthrough
CT: control target
= control target key end

     0   :  { %s1306_s12 = smov 0   ;;  %s1308_s13 = smov 0   ;;  %s1542_s0 = inlined_call_operand.vmem [shape: bf16[2,9,9,16], index: 0, kind: input, shape index: {}]   ;;  %s1543_s1 = inlined_call_operand.vmem [shape: bf16[4,16,128], index: 1, kind: input, shape index: {}]   ;;  %s1544_s2 = inlined_call_operand.vmem [shape: f32[2,8,8,128], index: 2, kind: output, shape index: {0}]   ;;  %s1545_s3 = inlined_call_operand.vmem [shape: f32[2,2,128], index: 3, kind: output, shape index: {1}]  }
   0x1   :  { %s1310_s14 = smov 0  }
   0x2 LB: > { %s26_s15 = sadd.s32 1, %s1280_s13  ;;  %p1075_p0 = scmp.ge.s32.totalorder %s1284_s14, 1  ;;  %s1284_s14 = sphi %s1310_s14, %s14_s14   ;;  %s1280_s13 = sphi %s1308_s13, %s1549_s13   ;;  %s1276_s12 = sphi %s1306_s12, %s1548_s12  }
   0x3   : > { %p28_p1 = scmp.ge.s32.totalorder %s26_s15, 2  ;;  %p154_p2 = scmp.lt.s32.totalorder %s1284_s14, 3 }
   0x5   : > { %s1551_s15 = smov (%p28_p1, %s26_s15), 0  ;;  %p155_p3 = pnand %p1075_p0, %p154_p2 }
   0x6   : > { %v1250_v0 = vld [vmem:[%s1543_s1 + $0x10] sm:$0xff] (!%p155_p3)   ;;  %p186_p4 = scmp.lt.s32.totalorder (!%p155_p3), %s1276_s12, 1  ;;  %v1253_v1 = vld [vmem:[%s1543_s1 + $0x8] sm:$0xff] (!%p155_p3)   ;;  %v1335_v2 = vld [vmem:[%s1543_s1] sm:$0xff] (!%p155_p3)   ;;  %vm364_vm0 = vcmask (!%p155_p3), 130048   ;;  %vm939_vm4 = vcmask (!%p155_p3), 1040384  }
   0x7   : > { %158 = sbr.rel (%p155_p3) target bundleno = 315 (0x13b), region = 28  ;;  %1181 = vmatprep.subr.bf16.mxu0 (!%p155_p3), %v1250_v0  ;;  %1161 = vmatprep.subr.bf16.mxu1 (!%p155_p3), %v1253_v1  ;;  %v1257_v3 = vld [vmem:[%s1543_s1 + $0x18] sm:$0xff] (!%p155_p3)   ;;  %vm228_vm1 = vsmask.f32 (!%p155_p3), 3328  ;;  %vm229_vm2 = vsmask.f32 (!%p155_p3), 7440 }
   0x8   : > { %1182 = vmatpush3.bf16.msra.mxu0 (!%p155_p3), %v1250_v0  ;;  %1162 = vmatpush3.bf16.msra.mxu1 (!%p155_p3), %v1253_v1  ;;  %vm1400_vm3 = vmor (!%p155_p3), %vm228_vm1, %vm229_vm2 }
   0x9   : > { %1171 = vmatprep.subr.bf16.mxu1 (!%p155_p3), %v1335_v2  ;;  %1191 = vmatprep.subr.bf16.mxu0 (!%p155_p3), %v1257_v3 }
   0xe   : > { %s1553_s12 = smov (!%p186_p4, %s1276_s12), 1 }
   0xf   : > { %s1225_s22 = smul.u32 72, %s1553_s12  ;;  %s1140_s28 = sshll.u32 %s1553_s12, 6 }
  0x10   : > { %s1519_s4 = scalar_lea.vmem %s1544_s2, %s1140_s28  ;;  %s1079_s5 = sshll.u32 %s1553_s12, 1 }
  0x11   : > { %s1345_s27 = scalar_lea.vmem %s1542_s0, %s1225_s22  ;;  %s204_s8 = scalar_lea.vmem %s1545_s3, %s1079_s5 }
  0x12   : > { %v1100_v4 = vld [vmem:[%s1345_s27 + $0x8] sm:$0xf]  ;;  %v1102_v5 = vld [vmem:[%s1345_s27 + $0x10] sm:$0xf]  ;;  %v1104_v6 = vld [vmem:[%s1345_s27 + $0x18] sm:$0xf] }
  0x13   : > { %v1118_v7 = vcombine.low %v1100_v4, %v1102_v5  ;;  %v680_v8 = vshrl.u32 %v1100_v4, 16  ;;  %v683_v9 = vshll.u32 %v1100_v4, 16  ;;  %v694_v10 = vshrl.u32 %v1102_v5, 16  ;;  %v1106_v11 = vld [vmem:[%s1345_s27 + $0x20] sm:$0xf] }
  0x14   : > { %v697_v12 = vshll.u32 %v1102_v5, 16  ;;  %v1119_v13 = vcombine.low %v1104_v6, %v1106_v11  ;;  %v708_v14 = vshrl.u32 %v1104_v6, 16  ;;  %v711_v15 = vshll.u32 %v1104_v6, 16  ;;  %v1108_v16 = vld [vmem:[%s1345_s27 + $0x28] sm:$0xf] }
  0x15   : > { %1183 = vmatprep.mubr.msk.bf16.mxu0 %vm364_vm0, %v1118_v7  ;;  %v682_v17 = vrot.slane %v680_v8, 4  ;;  %v685_v18 = vrot.slane %v683_v9, 5  ;;  %v696_v19 = vrot.slane %v694_v10, 4  ;;  %v722_v20 = vshrl.u32 %v1106_v11, 16  ;;  %v1110_v21 = vld [vmem:[%s1345_s27 + $0x30] sm:$0xf] }
  0x16   : > { %v699_v22 = vrot.slane %v697_v12, 5  ;;  %1184 = vmatmul.mubr.msk.bf16.vlgmr.msra.gmra.mrb[0].mxu0 %vm364_vm0, %v1119_v13  ;;  %v710_v23 = vrot.slane %v708_v14, 4  ;;  %v713_v24 = vrot.slane %v711_v15, 5  ;;  %v725_v25 = vshll.u32 %v1106_v11, 16  ;;  %v1356_v30 = vld [vmem:[%s1345_s27] sm:$0xf] }
  0x17   : > { %v686_v26 = vor.u32 %v685_v18, %v682_v17  ;;  %v724_v27 = vrot.slane %v722_v20, 4  ;;  %v1120_v28 = vcombine.low %v1108_v16, %v1110_v21  ;;  %v736_v29 = vshrl.u32 %v1108_v16, 16  ;;  %v211_v31 = vld [vmem:[%s1345_s27 + $0x4] sm:$0x1]  ;;  %1192 = vmatpush3.bf16.msra.mxu0 %v1257_v3  ;;  %v1360_v36 = vld [vmem:[%s1345_s27 + $0x8] sm:$0xf] }
  0x18   : > { %v700_v32 = vor.u32 %v699_v22, %v696_v19  ;;  %v714_v33 = vor.u32 %v713_v24, %v710_v23  ;;  %v727_v34 = vrot.slane %v725_v25, 5  ;;  %v739_v35 = vshll.u32 %v1108_v16, 16  ;;  %v213_v37 = vld [vmem:[%s1345_s27 + $0xc] sm:$0x1]  ;;  %v1112_v41 = vld [vmem:[%s1345_s27 + $0x38] sm:$0xf] }
  0x19   : > { %v1363_v38 = vrot.slane %v686_v26, 4  ;;  %1187 = vmatprep.mubr.msk.bf16.mxu0 %vm364_vm0, %v1120_v28  ;;  %v750_v39 = vshrl.u32 %v1110_v21, 16  ;;  %v753_v40 = vshll.u32 %v1110_v21, 16  ;;  %v1371_v45 = vrot.slane %v736_v29, 4  ;;  %v1374_v46 = vld [vmem:[%s1345_s27 + $0x40] sm:$0xf] }
  0x1a   : > { %v1367_v42 = vrot.slane %v700_v32, 4  ;;  %v1369_v43 = vrot.slane %v714_v33, 4  ;;  %v728_v44 = vor.u32 %v727_v34, %v724_v27  ;;  %v1376_v47 = vrot.slane %v739_v35, 5  ;;  %v1388_v59 = vld [vmem:[%s1345_s27 + $0x10] sm:$0xf] }
  0x1b   : > { %v1378_v48 = vrot.slane %v750_v39, 4  ;;  %v232_v49 = vshrl.u32 %v1356_v30, 16  ;;  %v235_v50 = vshll.u32 %v1356_v30, 16  ;;  %v1382_v51 = vrot.slane %v753_v40, 5  ;;  %v215_v0 = vld [vmem:[%s1345_s27 + $0x14] sm:$0x1] }
  0x1c   : > { %v241_v52 = vshll.u32 %v211_v31, 16  ;;  %v246_v53 = vshrl.u32 %v1360_v36, 16  ;;  %v249_v54 = vshll.u32 %v1360_v36, 16  ;;  %v255_v57 = vshll.u32 %v213_v37, 16  ;;  %v1396_v6 = vld [vmem:[%s1345_s27 + $0x18] sm:$0xf] }
  0x1d   : > { %v234_v55 = vrot.slane %v232_v49, 4  ;;  %v237_v56 = vrot.slane %v235_v50, 5  ;;  %v1121_v58 = vcombine.low %v1112_v41, %v1374_v46  ;;  %v1390_v60 = vrot.slane %v728_v44, 4  ;;  %v217_v11 = vld [vmem:[%s1345_s27 + $0x1c] sm:$0x1] }
  0x1e   : > { %v248_v61 = vrot.slane %v246_v53, 4  ;;  %v251_v62 = vrot.slane %v249_v54, 5  ;;  %v764_v63 = vshrl.u32 %v1112_v41, 16  ;;  %v243_v3 = vrot.slane %v241_v52, 5  ;;  %v1101_v17 = vld [vmem:[%s1345_s27 + $0xc] sm:$0x1] }
  0x1f   : > { %v238_v1 = vor.u32 %v237_v56, %v234_v55  ;;  %1188 = vmatmul.mubr.msk.bf16.gmra.mrb[4].mxu0 %vm364_vm0, %v1121_v58  ;;  %v767_v4 = vshll.u32 %v1112_v41, 16  ;;  %v778_v5 = vshrl.u32 %v1374_v46, 16  ;;  %v257_v9 = vrot.slane %v255_v57, 5  ;;  %v1103_v22 = vld [vmem:[%s1345_s27 + $0x14] sm:$0x1] }
  0x20   : > { %v252_v8 = vor.u32 %v251_v62, %v248_v61  ;;  %v1404_v10 = vrot.slane %v764_v63, 4  ;;  %v260_v12 = vshrl.u32 %v1388_v59, 16  ;;  %v781_v15 = vshll.u32 %v1374_v46, 16  ;;  %v1421_v27 = vld [vmem:[%s1345_s27 + $0x20] sm:$0xf] }
  0x21   : > { %v239_v13 = vrot.slane %v238_v1, 4  ;;  %v1408_v14 = vrot.slane %v767_v4, 5  ;;  %v263_v16 = vshll.u32 %v1388_v59, 16  ;;  %v1413_v19 = vrot.slane %v778_v5, 4  ;;  %v219_v33 = vld [vmem:[%s1345_s27 + $0x24] sm:$0x1] }
  0x22   : > { %v253_v18 = vrot.slane %v252_v8, 4  ;;  %v262_v20 = vrot.slane %v260_v12, 4  ;;  %v269_v21 = vshll.u32 %v215_v0, 16  ;;  %v274_v25 = vshrl.u32 %v1396_v6, 16  ;;  %v1427_v40 = vld [vmem:[%s1345_s27 + $0x28] sm:$0xf] }
  0x23   : > { %v244_v23 = vsel %vm1400_vm3, %v239_v13, %v243_v3  ;;  %v265_v24 = vrot.slane %v263_v16, 5  ;;  %v277_v26 = vshll.u32 %v1396_v6, 16  ;;  %v283_v31 = vshll.u32 %v217_v11, 16  ;;  %v221_v53 = vld [vmem:[%s1345_s27 + $0x2c] sm:$0x1] }
  0x24   : > { %v258_v28 = vsel %vm1400_vm3, %v253_v18, %v257_v9  ;;  %v271_v29 = vrot.slane %v269_v21, 5  ;;  %v689_v32 = vshll.u32 %v1101_v17, 16  ;;  %v276_v37 = vrot.slane %v274_v25, 4  ;;  %v1105_v62 = vld [vmem:[%s1345_s27 + $0x1c] sm:$0x1] }
  0x25   : > { %v1082_v34 = vcombine.low %v244_v23, %v258_v28  ;;  %v266_v35 = vor.u32 %v265_v24, %v262_v20  ;;  %v279_v39 = vrot.slane %v277_v26, 5  ;;  %v285_v41 = vrot.slane %v283_v31, 5  ;;  %v1107_v4 = vld [vmem:[%s1345_s27 + $0x24] sm:$0x1]  ;;  %v1448_v11 = vld [vmem:[%s1345_s27 + $0x30] sm:$0xf] }
  0x26   : > { %v691_v44 = vrot.slane %v689_v32, 5  ;;  %v703_v46 = vshll.u32 %v1103_v22, 16  ;;  %v288_v49 = vshrl.u32 %v1421_v27, 16  ;;  %v291_v54 = vshll.u32 %v1421_v27, 16  ;;  %v1453_v17 = vld [vmem:[%s1345_s27 + $0x38] sm:$0xf] }
  0x27   : > { %1163 = vmatprep.mubr.msk.bf16.mxu1 %vm364_vm0, %v1082_v34  ;;  %v267_v50 = vrot.slane %v266_v35, 4  ;;  %v280_v52 = vor.u32 %v279_v39, %v276_v37  ;;  %v297_v55 = vshll.u32 %v219_v33, 16  ;;  %v302_v61 = vshrl.u32 %v1427_v40, 16  ;;  %v225_v32 = vld [vmem:[%s1345_s27 + $0x3c] sm:$0x1] }
  0x28   : > { %v692_v56 = vsel %vm1400_vm3, %v1363_v38, %v691_v44  ;;  %v705_v57 = vrot.slane %v703_v46, 5  ;;  %v290_v58 = vrot.slane %v288_v49, 4  ;;  %v1438_v63 = vrot.slane %v781_v15, 5 }
  0x29   : > { %v272_v0 = vsel %vm1400_vm3, %v267_v50, %v271_v29  ;;  %v281_v1 = vrot.slane %v280_v52, 4  ;;  %v293_v3 = vrot.slane %v291_v54, 5  ;;  %v304_v38 = vrot.slane %v302_v61, 4 }
  0x2a   : > { %v706_v5 = vsel %vm1400_vm3, %v1367_v42, %v705_v57  ;;  %v305_v8 = vshll.u32 %v1427_v40, 16  ;;  %v311_v9 = vshll.u32 %v221_v53, 16  ;;  %v717_v16 = vshll.u32 %v1105_v62, 16  ;;  %v223_v42 = vld [vmem:[%s1345_s27 + $0x34] sm:$0x1] }
  0x2b   : > { %v286_v12 = vsel %vm1400_vm3, %v281_v1, %v285_v41  ;;  %v1129_v13 = vcombine.low %v692_v56, %v706_v5  ;;  %v294_v15 = vor.u32 %v293_v3, %v290_v58  ;;  %v299_v20 = vrot.slane %v297_v55, 5  ;;  %v1109_v41 = vld [vmem:[%s1345_s27 + $0x2c] sm:$0x1]  ;;  %v1113_v1 = vld [vmem:[%s1345_s27 + $0x3c] sm:$0x1] }
  0x2c   : > { %v1083_v18 = vcombine.low %v272_v0, %v286_v12  ;;  %v307_v21 = vrot.slane %v305_v8, 5  ;;  %v731_v22 = vshll.u32 %v1107_v4, 16  ;;  %v719_v24 = vrot.slane %v717_v16, 5  ;;  %v1115_v8 = vld [vmem:[%s1345_s27 + $0x44] sm:$0x1] }
  0x2d   : > { %1193 = vmatprep.mubr.msk.bf16.mxu0 %vm364_vm0, %v1129_v13  ;;  %v295_v23 = vrot.slane %v294_v15, 4  ;;  %v316_v25 = vshrl.u32 %v1448_v11, 16  ;;  %v319_v26 = vshll.u32 %v1448_v11, 16  ;;  %v313_v29 = vrot.slane %v311_v9, 5 }
  0x2e   : > { %1164 = vmatmul.mubr.msk.bf16.vlgmr.msra.gmra.mrb[0].mxu1 %vm364_vm0, %v1083_v18  ;;  %v308_v28 = vor.u32 %v307_v21, %v304_v38  ;;  %v733_v31 = vrot.slane %v731_v22, 5  ;;  %v330_v33 = vshrl.u32 %v1453_v17, 16  ;;  %v720_v34 = vsel %vm1400_vm3, %v1369_v43, %v719_v24  ;;  %v1111_v43 = vld [vmem:[%s1345_s27 + $0x34] sm:$0x1] }
  0x2f   : > { %1172 = vmatpush3.bf16.msra.mxu1 %v1335_v2  ;;  %v318_v35 = vrot.slane %v316_v25, 4  ;;  %v321_v37 = vrot.slane %v319_v26, 5  ;;  %v325_v39 = vshll.u32 %v223_v42, 16  ;;  %v300_v44 = vsel %vm1400_vm3, %v295_v23, %v299_v20 }
  0x30   : > { %v309_v46 = vrot.slane %v308_v28, 4  ;;  %v734_v49 = vsel %vm1400_vm3, %v1390_v60, %v733_v31  ;;  %v332_v50 = vrot.slane %v330_v33, 4  ;;  %v333_v53 = vshll.u32 %v1453_v17, 16 }
  0x31   : > { %v1130_v52 = vcombine.low %v720_v34, %v734_v49  ;;  %v322_v2 = vor.u32 %v321_v37, %v318_v35  ;;  %v339_v54 = vshll.u32 %v225_v32, 16  ;;  %v742_v56 = vor.u32 %v1376_v47, %v1371_v45 }
  0x32   : > { %v314_v55 = vsel %vm1400_vm3, %v309_v46, %v313_v29  ;;  %v745_v57 = vshll.u32 %v1109_v41, 16  ;;  %v756_v58 = vor.u32 %v1382_v51, %v1378_v48  ;;  %v327_v62 = vrot.slane %v325_v39, 5 }
  0x33   : > { %v1084_v60 = vcombine.low %v300_v44, %v314_v55  ;;  %1194 = vmatmul.mubr.msk.bf16.vlgmr.msra.gmra.mrb[0].mxu0 %vm364_vm0, %v1130_v52  ;;  %v323_v61 = vrot.slane %v322_v2, 4  ;;  %v335_v0 = vrot.slane %v333_v53, 5  ;;  %v743_v3 = vrot.slane %v742_v56, 4 }
  0x34   : > { %v747_v4 = vrot.slane %v745_v57, 5  ;;  %v757_v5 = vrot.slane %v756_v58, 4  ;;  %v759_v38 = vshll.u32 %v1111_v43, 16  ;;  %v341_v45 = vrot.slane %v339_v54, 5 }
  0x35   : > { %1167 = vmatprep.mubr.msk.bf16.mxu1 %vm364_vm0, %v1084_v60  ;;  %v336_v9 = vor.u32 %v335_v0, %v332_v50  ;;  %v770_v47 = vor.u32 %v1408_v14, %v1404_v10  ;;  %v773_v12 = vshll.u32 %v1113_v1, 16  ;;  %v784_v13 = vor.u32 %v1438_v63, %v1413_v19 }
  0x36   : > { %v748_v48 = vsel %vm1400_vm3, %v743_v3, %v747_v4  ;;  %v761_v51 = vrot.slane %v759_v38, 5  ;;  %v328_v15 = vsel %vm1400_vm3, %v323_v61, %v327_v62  ;;  %v787_v20 = vshll.u32 %v1115_v8, 16 }
  0x37   : > { %v337_v16 = vrot.slane %v336_v9, 4  ;;  %v771_v18 = vrot.slane %v770_v47, 4  ;;  %v775_v22 = vrot.slane %v773_v12, 5  ;;  %v785_v42 = vrot.slane %v784_v13, 4 }
  0x38   : > { %v762_v21 = vsel %vm1400_vm3, %v757_v5, %v761_v51  ;;  %v1091_v23 = vcombine.low %v1356_v30, %v1360_v36  ;;  %v789_v24 = vrot.slane %v787_v20, 5  ;;  %v1092_v30 = vcombine.low %v1388_v59, %v1396_v6 }
  0x39   : > { %v342_v10 = vsel %vm1400_vm3, %v337_v16, %v341_v45  ;;  %v1131_v14 = vcombine.low %v748_v48, %v762_v21  ;;  %v776_v63 = vsel %vm1400_vm3, %v771_v18, %v775_v22  ;;  %v1093_v36 = vcombine.low %v1421_v27, %v1427_v40 }
  0x3a   : > { %v1085_v19 = vcombine.low %v328_v15, %v342_v10  ;;  %v790_v25 = vsel %vm1400_vm3, %v785_v42, %v789_v24  ;;  %v1094_v7 = vcombine.low %v1448_v11, %v1453_v17 }
  0x3b   : > { %1197 = vmatprep.mubr.msk.bf16.mxu0 %vm364_vm0, %v1131_v14  ;;  %v1132_v26 = vcombine.low %v776_v63, %v790_v25 }
  0x3c   : > { %1168 = vmatmul.mubr.msk.bf16.gmra.mrb[4].mxu1 %vm364_vm0, %v1085_v19 }
  0x3d   : > { %1173 = vmatprep.mubr.msk.bf16.mxu1 %vm364_vm0, %v1091_v23  ;;  %1198 = vmatmul.mubr.msk.bf16.gmra.mrb[4].mxu0 %vm364_vm0, %v1132_v26 }
  0x44   : > { %1174 = vmatmul.mubr.msk.bf16.vlgmr.msra.gmra.mrb[0].mxu1 %vm364_vm0, %v1092_v30 }
  0x45   : > { %1177 = vmatprep.mubr.msk.bf16.mxu1 %vm364_vm0, %v1093_v36 }
  0x4c   : > { %1178 = vmatmul.mubr.msk.bf16.gmra.mrb[4].mxu1 %vm364_vm0, %v1094_v7 }
 0x106   : > { %v1195_v28 = vpop.f32.mrb[0].mxu0 }
 0x107   : > { %v858_v29 = vpop.f32.mrb[1].mxu0 }
 0x108   : > { %v1196_v31 = vpop.f32.mrb[2].mxu0 }
 0x109   : > { %v861_v32 = vpop.f32.mrb[3].mxu0 }
 0x110   : > { %v1199_v33 = vpop.f32.mrb[4].mxu0 }
 0x111   : > { %v874_v34 = vpop.f32.mrb[5].mxu0 }
 0x112   : > { %v1200_v35 = vpop.f32.mrb[6].mxu0 }
 0x113   : > { %v877_v59 = vpop.f32.mrb[7].mxu0 }
 0x117   : > { %v1175_v6 = vpop.f32.mrb[0].mxu1 }
 0x118   : > { %v1201_v27 = vadd.f32 %v1195_v28, %v1175_v6  ;;  %v514_v40 = vpop.f32.mrb[1].mxu1 }
 0x119   : > { %v1202_v11 = vadd.f32 %v858_v29, %v514_v40  ;;  %v1176_v17 = vpop.f32.mrb[2].mxu1 }
 0x11a   : > { %899 = vst [vmem:[%s1519_s4 + $0x10] sm:$0xff] %v1201_v27  ;;  %v1203_v37 = vadd.f32 %v1196_v31, %v1176_v17  ;;  %v517_v39 = vpop.f32.mrb[3].mxu1  ;;  %v920_v50 = vmul.f32 %v1201_v27, %v1201_v27 }
 0x11b   : > { %897 = vst [vmem:[%s1519_s4] sm:$0xff] %v1202_v11  ;;  %v1204_v41 = vadd.f32 %v861_v32, %v517_v39  ;;  %v918_v44 = vmul.f32 %v1202_v11, %v1202_v11 }
 0x11c   : > { %900 = vst [vmem:[%s1519_s4 + $0x18] sm:$0xff] %v1203_v37  ;;  %v921_v55 = vmul.f32 %v1203_v37, %v1203_v37 }
 0x11d   : > { %898 = vst [vmem:[%s1519_s4 + $0x8] sm:$0xff] %v1204_v41  ;;  %v905_v46 = vadd.f32 %v1204_v41, %v1202_v11  ;;  %v919_v49 = vmul.f32 %v1204_v41, %v1204_v41 }
 0x11f   : > { %v906_v52 = vadd.f32 %v1201_v27, %v905_v46  ;;  %v926_v2 = vadd.f32 %v919_v49, %v918_v44  ;;  %v1179_v53 = vpop.f32.mrb[4].mxu1 }
 0x120   : > { %v1205_v54 = vadd.f32 %v1199_v33, %v1179_v53  ;;  %v530_v43 = vpop.f32.mrb[5].mxu1 }
 0x121   : > { %v927_v56 = vadd.f32 %v926_v2, %v920_v50  ;;  %v1206_v57 = vadd.f32 %v874_v34, %v530_v43  ;;  %v907_v58 = vadd.f32 %v1203_v37, %v906_v52  ;;  %v1180_v60 = vpop.f32.mrb[6].mxu1 }
 0x122   : > { %903 = vst [vmem:[%s1519_s4 + $0x30] sm:$0xff] %v1205_v54  ;;  %v1207_v61 = vadd.f32 %v1200_v35, %v1180_v60  ;;  %v533_v62 = vpop.f32.mrb[7].mxu1  ;;  %v924_v9 = vmul.f32 %v1205_v54, %v1205_v54 }
 0x123   : > { %901 = vst [vmem:[%s1519_s4 + $0x20] sm:$0xff] %v1206_v57  ;;  %v908_v0 = vadd.f32 %v1206_v57, %v907_v58  ;;  %v922_v1 = vmul.f32 %v1206_v57, %v1206_v57  ;;  %v928_v3 = vadd.f32 %v927_v56, %v921_v55  ;;  %v1208_v4 = vadd.f32 %v877_v59, %v533_v62 }
 0x124   : > { %904 = vst [vmem:[%s1519_s4 + $0x38] sm:$0xff] %v1207_v61  ;;  %v925_v48 = vmul.f32 %v1207_v61, %v1207_v61 }
 0x125   : > { %v929_v5 = vadd.f32 %v928_v3, %v922_v1  ;;  %902 = vst [vmem:[%s1519_s4 + $0x28] sm:$0xff] %v1208_v4  ;;  %v909_v38 = vadd.f32 %v1208_v4, %v908_v0  ;;  %v923_v8 = vmul.f32 %v1208_v4, %v1208_v4 }
 0x127   : > { %v910_v45 = vadd.f32 %v1205_v54, %v909_v38  ;;  %v930_v47 = vadd.f32 %v929_v5, %v923_v8 }
 0x129   : > { %v911_v51 = vadd.f32 %v1207_v61, %v910_v45  ;;  %v931_v12 = vadd.f32 %v930_v47, %v924_v9 }
 0x12b   : > { %v912_v13 = vrot.slane %v911_v51, 4  ;;  %v932_v15 = vadd.f32 %v931_v12, %v925_v48 }
 0x12d   : > { %v913_v16 = vadd.f32 %v912_v13, %v911_v51  ;;  %v933_v18 = vrot.slane %v932_v15, 4 }
 0x12f   : > { %v914_v20 = vrot.slane %v913_v16, 2  ;;  %v934_v21 = vadd.f32 %v933_v18, %v932_v15 }
 0x131   : > { %v915_v22 = vadd.f32 %v914_v20, %v913_v16  ;;  %v935_v42 = vrot.slane %v934_v21, 2 }
 0x133   : > { %v916_v10 = vrot.slane %v915_v22, 1  ;;  %v936_v14 = vadd.f32 %v935_v42, %v934_v21 }
 0x135   : > { %v937_v23 = vrot.slane %v936_v14, 1  ;;  %v917_v24 = vadd.f32 %v916_v10, %v915_v22 }
 0x137   : > { %v938_v19 = vadd.f32 %v937_v23, %v936_v14 }
 0x139   : > { %v940_v63 = vsel %vm939_vm4, %v917_v24, %v938_v19 }
 0x13a   : > { %945 = vst [vmem:[%s204_s8] sm:$0x3] %v940_v63 }
 0x13b PF: > { %s14_s14 = sadd.s32 1, %s1284_s14   ;;  %s1548_s12 = smov %s1280_s13 }
 0x13c   : > { %p11_p5 = scmp.ge.s32.totalorder %s14_s14, 4   ;;  %s1549_s13 = smov %s1551_s15 }
 0x13e   :  { %13 = sbr.rel (!%p11_p5) target bundleno = 2 (0x2), region = 83 }

</bundles_post_ra>
